<compile_context>
chip_gen: v7x
topology: tpu7x:2x2x1
jax: 0.10.0
libtpu: 0.0.40
codegen_flags: <defaults>
</compile_context>

<pallas_src>
import functools

import jax
import jax.numpy as jnp
from jax.experimental import pallas as pl
from jax.experimental.pallas import tpu as pltpu


def _mlp_base_fused_kernel(x_ref, w01_ref, b01_ref, w2_ref, b2_ref,
                           clw_ref, clb_ref, ha_ref, val_ref, *, hidden_size):
    """Fused actor+critic MLP + critic_linear for one batch tile.

    Lane layout of the fused hidden state: [0, H) = actor, [H, 2H) = critic.
    Outputs: ha_ref (TB, H) = hidden_actor, val_ref (TB, 1) = value.
    """
    H = hidden_size
    wdt = w01_ref.dtype                      # bf16 when packed for v5e, else f32
    x = x_ref[...].astype(wdt)

    # Fused layer 1: (TB, num_inputs) @ (num_inputs, 2H) -> lane-dense 128 cols.
    h1 = jnp.tanh(
        jnp.dot(x, w01_ref[...], preferred_element_type=jnp.float32) + b01_ref[...])

    # Fused layer 2: block-diagonal (2H, 2H) keeps actor/critic independent.
    h2 = jnp.tanh(
        jnp.dot(h1.astype(wdt), w2_ref[...],
                preferred_element_type=jnp.float32) + b2_ref[...])

    # hidden_actor lives in lanes [0, H).
    ha_ref[...] = h2[:, :H].astype(ha_ref.dtype)

    # critic_linear as VPU multiply + lane (XLU) reduce. clw_ref is zero on the
    # actor lanes, so the full-width reduce equals hidden_critic @ Wcl.
    value = jnp.sum(h2 * clw_ref[...], axis=-1, keepdims=True) + clb_ref[0, 0]
    val_ref[...] = value.astype(val_ref.dtype)


def _round_up(n, m):
    return (n + m - 1) // m * m


def pack_params(params, compute_dtype=jnp.float32):
    """Fuse the per-layer params into the kernel's fused operands (do once).

    compute_dtype: dtype for the two matmul weights (use jnp.bfloat16 on v5e).
    Biases stay f32 (they are added to the f32 MXU accumulation).
    """
    H = params["aw0"].shape[1]
    w01 = jnp.concatenate([params["aw0"], params["cw0"]], axis=1)          # (in, 2H)
    b01 = jnp.concatenate([params["ab0"], params["cb0"]], axis=1)          # (1, 2H)
    w2 = jnp.zeros((2 * H, 2 * H), jnp.float32)
    w2 = w2.at[:H, :H].set(params["aw1"]).at[H:, H:].set(params["cw1"])    # block diag
    b2 = jnp.concatenate([params["ab1"], params["cb1"]], axis=1)           # (1, 2H)
    clw = jnp.concatenate(
        [jnp.zeros((1, H), jnp.float32), params["clw"].reshape(1, H)], axis=1)  # (1, 2H)
    clb = params["clb"].reshape(1, 1).astype(jnp.float32)                  # (1, 1) SMEM
    return {"w01": w01.astype(compute_dtype), "b01": b01.astype(jnp.float32),
            "w2": w2.astype(compute_dtype), "b2": b2.astype(jnp.float32),
            "clw": clw.astype(jnp.float32), "clb": clb,
            "hidden_size": H}


def mlp_base_forward(inputs, rnn_hxs, masks, fused, *, block_rows=2048):
    """Calls the fused Pallas kernel; returns (value, hidden_actor, rnn_hxs)."""
    del masks  # not used when recurrent=False (rnn_hxs passed through)
    B, num_inputs = inputs.shape
    H = fused["hidden_size"]
    F2 = 2 * H

    # ---------------- batch tiling ----------------
    # Pad rows only to the f32 sublane multiple (8); the ragged last grid tile
    # (when B_pad % TB != 0) is handled by Pallas block masking, so no
    # pad-to-tile copy is ever made.
    B_pad = _round_up(B, 8)
    TB = min(_round_up(block_rows, 8), B_pad)
    if B_pad >= 16:
        # Keep >=2 tiles so the "parallel" batch axis shards across both
        # TensorCores on v7x (harmless single extra step on v5e/v6e).
        TB = min(TB, _round_up((B_pad + 1) // 2, 8))
    # VMEM budget for the double-buffered per-tile arrays:
    #   x (num_inputs lanes) + hidden_actor (H lanes) + value (lane-padded 128).
    per_row_bytes = (num_inputs + H + 128) * 4
    while TB > 8 and 2 * TB * per_row_bytes > (24 << 20):
        TB = max(8, _round_up(TB // 2, 8))
    grid = ((B_pad + TB - 1) // TB,)

    x = inputs if B_pad == B else jnp.pad(inputs, ((0, B_pad - B), (0, 0)))

    # Explicit scoped-VMEM limit: covers v5e's 16 MiB default and stays within
    # v7x's 64 MiB physical VMEM.
    weight_bytes = 2 * (num_inputs * F2 + F2 * F2 + 3 * F2) * 4
    vmem_limit = min(max(2 * TB * per_row_bytes + weight_bytes + (2 << 20), 8 << 20),
                     32 << 20)

    resident = lambda shape: pl.BlockSpec(shape, lambda i: (0, 0))

    out_ha, out_val = pl.pallas_call(
        functools.partial(_mlp_base_fused_kernel, hidden_size=H),
        out_shape=(jax.ShapeDtypeStruct((B_pad, H), jnp.float32),
                   jax.ShapeDtypeStruct((B_pad, 1), jnp.float32)),
        grid=grid,
        in_specs=[
            pl.BlockSpec((TB, num_inputs), lambda i: (i, 0)),   # x: tiled on rows
            resident((num_inputs, F2)),                         # fused layer-1 W
            resident((1, F2)),                                  # fused layer-1 b
            resident((F2, F2)),                                 # block-diag layer-2 W
            resident((1, F2)),                                  # fused layer-2 b
            resident((1, F2)),                                  # zero-padded critic_linear W
            pl.BlockSpec(memory_space=pltpu.MemorySpace.SMEM),  # critic_linear b (scalar)
        ],
        out_specs=[pl.BlockSpec((TB, H), lambda i: (i, 0)),     # hidden_actor
                   pl.BlockSpec((TB, 1), lambda i: (i, 0))],    # value
        compiler_params=pltpu.CompilerParams(
            dimension_semantics=("parallel",),
            vmem_limit_bytes=vmem_limit),
    )(x, fused["w01"], fused["b01"], fused["w2"], fused["b2"],
      fused["clw"], fused["clb"])

    return out_val[:B], out_ha[:B], rnn_hxs


# ---------------- reference (pure JAX, unfused) + init ----------------

def mlp_base_reference(inputs, rnn_hxs, params):
    ha = jnp.tanh(inputs @ params["aw0"] + params["ab0"])
    ha = jnp.tanh(ha @ params["aw1"] + params["ab1"])
    hc = jnp.tanh(inputs @ params["cw0"] + params["cb0"])
    hc = jnp.tanh(hc @ params["cw1"] + params["cb1"])
    value = hc @ params["clw"] + params["clb"]
    return value, ha, rnn_hxs


def _orthogonal(key, shape, gain):
    """Deterministic orthogonal init (torch.nn.init.orthogonal_ semantics)."""
    rows, cols = shape
    n = max(rows, cols)
    a = jax.random.normal(key, (n, n), dtype=jnp.float32)
    q, r = jnp.linalg.qr(a)
    q = q * jnp.sign(jnp.diag(r))
    return gain * q[:rows, :cols]


def init_params(key, num_inputs, hidden_size):
    gain = float(jnp.sqrt(2.0))
    ks = jax.random.split(key, 5)
    # Weights stored as (in_features, out_features) == PyTorch weight.T
    return {
        "aw0": _orthogonal(ks[0], (hidden_size, num_inputs), gain).T,
        "ab0": jnp.zeros((1, hidden_size), jnp.float32),
        "aw1": _orthogonal(ks[1], (hidden_size, hidden_size), gain).T,
        "ab1": jnp.zeros((1, hidden_size), jnp.float32),
        "cw0": _orthogonal(ks[2], (hidden_size, num_inputs), gain).T,
        "cb0": jnp.zeros((1, hidden_size), jnp.float32),
        "cw1": _orthogonal(ks[3], (hidden_size, hidden_size), gain).T,
        "cb1": jnp.zeros((1, hidden_size), jnp.float32),
        "clw": _orthogonal(ks[4], (1, hidden_size), gain).T,
        "clb": jnp.zeros((1, 1), jnp.float32),
    }


if __name__ == "__main__":
    key = jax.random.PRNGKey(0)
    k_in1, k_in2, k_p = jax.random.split(key, 3)

    num_inputs, hidden_size = 32, 64
    params = init_params(k_p, num_inputs, hidden_size)
    # f32 weights (numerical parity with the f32 reference); pass
    # compute_dtype=jnp.bfloat16 on v5e to avoid the slow f32 MXU path.
    fused = pack_params(params)

    fwd = jax.jit(functools.partial(mlp_base_forward, fused=fused))

    # B=8: single-tile path; B=50: exercises the sublane pad + ragged,
    # two-tile (megacore-friendly) grid.
    for B, k in ((8, k_in1), (50, k_in2)):
        inputs = jax.random.normal(k, (B, num_inputs), dtype=jnp.float32)
        rnn_hxs = jnp.zeros((B, 1), jnp.float32)   # recurrent_hidden_state_size == 1
        masks = jnp.ones((B, 1), jnp.float32)

        value, hidden_actor, rnn_hxs_out = fwd(inputs, rnn_hxs, masks)
        jax.block_until_ready((value, hidden_actor, rnn_hxs_out))

        # shapes match the PyTorch module's outputs
        assert value.shape == (B, 1)
        assert hidden_actor.shape == (B, hidden_size)
        assert rnn_hxs_out.shape == (B, 1)

        # numerics match the unfused reference
        v_ref, ha_ref, _ = mlp_base_reference(inputs, rnn_hxs, params)
        assert jnp.allclose(value, v_ref, atol=1e-5, rtol=1e-5)
        assert jnp.allclose(hidden_actor, ha_ref, atol=1e-5, rtol=1e-5)

    print("KERNEL_OK")
</pallas_src>

<mosaic_0001>
module attributes {stable_mosaic.version = 11 : i64} {
  func.func @_mlp_base_fused_kernel(%arg0: i32, %arg1: memref<8x32xf32, #tpu.memory_space<vmem>>, %arg2: memref<32x128xf32, #tpu.memory_space<vmem>>, %arg3: memref<1x128xf32, #tpu.memory_space<vmem>>, %arg4: memref<128x128xf32, #tpu.memory_space<vmem>>, %arg5: memref<1x128xf32, #tpu.memory_space<vmem>>, %arg6: memref<1x128xf32, #tpu.memory_space<vmem>>, %arg7: memref<1x1xf32, #tpu.memory_space<smem>>, %arg8: memref<8x64xf32, #tpu.memory_space<vmem>>, %arg9: memref<8x1xf32, #tpu.memory_space<vmem>>) attributes {dimension_semantics = [#tpu.dimension_semantics<parallel>], iteration_bounds = array<i64: 1>, scalar_prefetch = 0 : i64, scratch_operands = 0 : i64, tpu.core_type = #tpu.core_type<tc>, window_params = [{transform_indices = @transform_0, window_bounds = array<i64: 8, 32>}, {pipeline_mode = #tpu.pipeline_mode<synchronous>, transform_indices = @transform_1, window_bounds = array<i64: 32, 128>}, {pipeline_mode = #tpu.pipeline_mode<synchronous>, transform_indices = @transform_2, window_bounds = array<i64: 1, 128>}, {pipeline_mode = #tpu.pipeline_mode<synchronous>, transform_indices = @transform_3, window_bounds = array<i64: 128, 128>}, {pipeline_mode = #tpu.pipeline_mode<synchronous>, transform_indices = @transform_4, window_bounds = array<i64: 1, 128>}, {pipeline_mode = #tpu.pipeline_mode<synchronous>, transform_indices = @transform_5, window_bounds = array<i64: 1, 128>}, {transform_indices = @transform_6, window_bounds = array<i64: 1, 1>}, {transform_indices = @transform_7, window_bounds = array<i64: 8, 64>}, {transform_indices = @transform_8, window_bounds = array<i64: 8, 1>}]} {
    %c0 = arith.constant 0 : index
    %c0_0 = arith.constant 0 : index
    %0 = vector.load %arg1[%c0, %c0_0] : memref<8x32xf32, #tpu.memory_space<vmem>>, vector<8x32xf32>
    %c0_1 = arith.constant 0 : index
    %c0_2 = arith.constant 0 : index
    %1 = vector.load %arg2[%c0_1, %c0_2] : memref<32x128xf32, #tpu.memory_space<vmem>>, vector<32x128xf32>
    %cst = arith.constant dense<0.000000e+00> : vector<8x128xf32>
    %2 = tpu.matmul %0, %1, %cst {dimension_numbers = #tpu.dot_dimension_numbers<[1], [0], [0], [1], [0, 0, 1, 1], [], []>} : vector<8x32xf32>, vector<32x128xf32>, vector<8x128xf32> -> vector<8x128xf32>
    %c0_3 = arith.constant 0 : index
    %c0_4 = arith.constant 0 : index
    %3 = vector.load %arg3[%c0_3, %c0_4] : memref<1x128xf32, #tpu.memory_space<vmem>>, vector<1x128xf32>
    %4 = vector.broadcast %3 : vector<1x128xf32> to vector<8x128xf32>
    %5 = arith.addf %2, %4 : vector<8x128xf32>
    %6 = math.tanh %5 : vector<8x128xf32>
    %c0_5 = arith.constant 0 : index
    %c0_6 = arith.constant 0 : index
    %7 = vector.load %arg4[%c0_5, %c0_6] : memref<128x128xf32, #tpu.memory_space<vmem>>, vector<128x128xf32>
    %cst_7 = arith.constant dense<0.000000e+00> : vector<8x128xf32>
    %8 = tpu.matmul %6, %7, %cst_7 {dimension_numbers = #tpu.dot_dimension_numbers<[1], [0], [0], [1], [0, 0, 1, 1], [], []>} : vector<8x128xf32>, vector<128x128xf32>, vector<8x128xf32> -> vector<8x128xf32>
    %c0_8 = arith.constant 0 : index
    %c0_9 = arith.constant 0 : index
    %9 = vector.load %arg5[%c0_8, %c0_9] : memref<1x128xf32, #tpu.memory_space<vmem>>, vector<1x128xf32>
    %10 = vector.broadcast %9 : vector<1x128xf32> to vector<8x128xf32>
    %11 = arith.addf %8, %10 : vector<8x128xf32>
    %12 = math.tanh %11 : vector<8x128xf32>
    %13 = vector.extract_strided_slice %12 {offsets = [0, 0], sizes = [8, 64], strides = [1, 1]} : vector<8x128xf32> to vector<8x64xf32>
    %c0_10 = arith.constant 0 : index
    %c0_11 = arith.constant 0 : index
    %14 = vector.load %arg8[%c0_10, %c0_11] : memref<8x64xf32, #tpu.memory_space<vmem>>, vector<8x64xf32>
    tpu.vector_store %arg8[%c0_10, %c0_11], %13 {strides = array<i32>} : memref<8x64xf32, #tpu.memory_space<vmem>>, vector<8x64xf32>,
    %c0_12 = arith.constant 0 : index
    %c0_13 = arith.constant 0 : index
    %15 = vector.load %arg6[%c0_12, %c0_13] : memref<1x128xf32, #tpu.memory_space<vmem>>, vector<1x128xf32>
    %16 = vector.broadcast %15 : vector<1x128xf32> to vector<8x128xf32>
    %17 = arith.mulf %12, %16 : vector<8x128xf32>
    %cst_14 = arith.constant dense<0.000000e+00> : vector<8xf32>
    %18 = vector.multi_reduction <add>, %17, %cst_14 [1] : vector<8x128xf32> to vector<8xf32>
    %19 = vector.shape_cast %18 : vector<8xf32> to vector<8x1xf32>
    %c0_15 = arith.constant 0 : index
    %c0_16 = arith.constant 0 : index
    %20 = memref.load %arg7[%c0_15, %c0_16] : memref<1x1xf32, #tpu.memory_space<smem>>
    %21 = vector.broadcast %20 : f32 to vector<8x1xf32>
    %22 = arith.addf %19, %21 : vector<8x1xf32>
    %c0_17 = arith.constant 0 : index
    %c0_18 = arith.constant 0 : index
    %23 = vector.load %arg9[%c0_17, %c0_18] : memref<8x1xf32, #tpu.memory_space<vmem>>, vector<8x1xf32>
    tpu.vector_store %arg9[%c0_17, %c0_18], %22 {strides = array<i32>} : memref<8x1xf32, #tpu.memory_space<vmem>>, vector<8x1xf32>,
    return
  }
  func.func @transform_0(%arg0: i32) -> (i32, i32) {
    %c0_i32 = arith.constant 0 : i32
    %c0_i32_0 = arith.constant 0 : i32
    return %arg0, %c0_i32 : i32, i32
  }
  func.func @transform_1(%arg0: i32) -> (i32, i32) {
    %c0_i32 = arith.constant 0 : i32
    %c0_i32_0 = arith.constant 0 : i32
    %c0_i32_1 = arith.constant 0 : i32
    return %c0_i32, %c0_i32_0 : i32, i32
  }
  func.func @transform_2(%arg0: i32) -> (i32, i32) {
    %c0_i32 = arith.constant 0 : i32
    %c0_i32_0 = arith.constant 0 : i32
    %c0_i32_1 = arith.constant 0 : i32
    return %c0_i32, %c0_i32_0 : i32, i32
  }
  func.func @transform_3(%arg0: i32) -> (i32, i32) {
    %c0_i32 = arith.constant 0 : i32
    %c0_i32_0 = arith.constant 0 : i32
    %c0_i32_1 = arith.constant 0 : i32
    return %c0_i32, %c0_i32_0 : i32, i32
  }
  func.func @transform_4(%arg0: i32) -> (i32, i32) {
    %c0_i32 = arith.constant 0 : i32
    %c0_i32_0 = arith.constant 0 : i32
    %c0_i32_1 = arith.constant 0 : i32
    return %c0_i32, %c0_i32_0 : i32, i32
  }
  func.func @transform_5(%arg0: i32) -> (i32, i32) {
    %c0_i32 = arith.constant 0 : i32
    %c0_i32_0 = arith.constant 0 : i32
    %c0_i32_1 = arith.constant 0 : i32
    return %c0_i32, %c0_i32_0 : i32, i32
  }
  func.func @transform_6(%arg0: i32) -> (i32, i32) {
    %c0_i32 = arith.constant 0 : i32
    %c0_i32_0 = arith.constant 0 : i32
    %c0_i32_1 = arith.constant 0 : i32
    return %c0_i32, %c0_i32_0 : i32, i32
  }
  func.func @transform_7(%arg0: i32) -> (i32, i32) {
    %c0_i32 = arith.constant 0 : i32
    %c0_i32_0 = arith.constant 0 : i32
    return %arg0, %c0_i32 : i32, i32
  }
  func.func @transform_8(%arg0: i32) -> (i32, i32) {
    %c0_i32 = arith.constant 0 : i32
    %c0_i32_0 = arith.constant 0 : i32
    return %arg0, %c0_i32 : i32, i32
  }
}

</mosaic_0001>

<bundles_post_ra>
// kernel: mlp_base_forward.1
= control target key start
LH: loop header
LB: loop body
LE: loop exit
PB: predicated region body
PF: predicated region fallthrough
CT: control target
= control target key end

     0   :  { %15 = vsyncpa [#allocation4], 0  ;;  %s619_s0 = inlined_call_operand.hbm [shape: f32[8,32], index: 0, kind: input, shape index: {}]   ;;  %s620_s1 = inlined_call_operand.hbm [shape: f32[32,128], index: 1, kind: input, shape index: {}]   ;;  %s621_s2 = inlined_call_operand.vmem [shape: f32[1,128], index: 2, kind: input, shape index: {}, may-alias: {2,4}]   ;;  %s622_s3 = inlined_call_operand.hbm [shape: f32[128,128], index: 3, kind: input, shape index: {}]   ;;  %s623_s4 = inlined_call_operand.vmem [shape: f32[1,128], index: 4, kind: input, shape index: {}, may-alias: {2,4}]   ;;  %s624_s5 = inlined_call_operand.vmem [shape: f32[1,128], index: 5, kind: input, shape index: {}]   ;;  %s625_s6 = inlined_call_operand.<no memory space> [shape: f32[1,1], index: 6, kind: input, shape index: {}]   ;;  %s626_s7 = inlined_call_operand.hbm [shape: f32[8,64], index: 7, kind: output, shape index: {0}]   ;;  %s627_s8 = inlined_call_operand.vmem [shape: f32[8,1], index: 8, kind: output, shape index: {1}]  }
   0x1   :  { %16 = vsyncpa [#allocation7], 0 }
   0x2   :  { %17 = vsyncpa [#allocation5], 0  ;;  %s496_s27 = smov [#allocation6]   ;;  %s402_s9 = scalar_lea.hbm %s620_s1, 512 }
   0x3   :  { %s33_s28 = sshll.u32 %s496_s27, 4  ;;  %p403_p0 = scmp.ne.s32.totalorder %s620_s1, %s402_s9  ;;  %s34_s28 = int_to_ptr.vmem [resolvable:$true] %s33_s28 }
   0x4   :  { %p406_p1 = scmp.lt.u32.totalorder %s402_s9, %s620_s1 }
   0x6   :  { %p408_p2 = pnand %p406_p1, %p403_p0 }
   0x8   :  { %411 = shalt.err (!%p408_p2)
}
   0x9   :  { %s412_s14 = scalar_lea.vmem %s34_s28, 512  ;;  %p417_p4 = scmp.lt.s32.totalorder %s34_s28, %s34_s28 }
   0xa   :  { %p413_p3 = scmp.ne.s32.totalorder %s34_s28, %s412_s14  ;;  %p418_p5 = scmp.lt.s32.totalorder %s412_s14, %s412_s14 }
   0xc   :  { %p419_p6 = por %p418_p5, %p417_p4 }
   0xe   :  { %p420_p7 = pnand %p419_p6, %p413_p3 }
  0x10   :  { %423 = shalt.err (!%p420_p7)
}
  0x11   :  { %s497_s15 = smov 128   ;;  %s498_s16 = smov 8  }
  0x12   :  { %39 = dma.hbm_to_vmem [thread:$0]  %s620_s1, 512, %s34_s28, [#allocation7], %s497_s15, %s497_s15, %s498_s16  }
  0x13   :  { %s499_s19 = smov [#allocation3]   ;;  %s500_s21 = smov [#allocation8]  }
  0x14   :  { %s24_s20 = sshll.u32 %s499_s19, 4  ;;  %s47_s22 = sshll.u32 %s500_s21, 4  ;;  %s25_s20 = int_to_ptr.vmem [resolvable:$true] %s24_s20  ;;  %s48_s22 = int_to_ptr.vmem [resolvable:$true] %s47_s22 }
  0x15   :  { %s424_s25 = scalar_lea.hbm %s619_s0, 128 }
  0x16   :  { %p425_p8 = scmp.ne.s32.totalorder %s619_s0, %s424_s25  ;;  %p428_p9 = scmp.lt.u32.totalorder %s424_s25, %s619_s0 }
  0x18   :  { %p430_p10 = pnand %p428_p9, %p425_p8 }
  0x1a   :  { %433 = shalt.err (!%p430_p10)
}
  0x1b   :  { %s434_s1 = scalar_lea.vmem %s25_s20, 128  ;;  %p439_p12 = scmp.lt.s32.totalorder %s25_s20, %s25_s20 }
  0x1c   :  { %p435_p11 = scmp.ne.s32.totalorder %s25_s20, %s434_s1  ;;  %p440_p13 = scmp.lt.s32.totalorder %s434_s1, %s434_s1 }
  0x1e   :  { %p441_p0 = por %p440_p13, %p439_p12 }
  0x20   :  { %p442_p1 = pnand %p441_p0, %p435_p11 }
  0x22   :  { %445 = shalt.err (!%p442_p1)
}
  0x23   :  { %27 = dma.hbm_to_vmem [thread:$0]  %s619_s0, 128, %s25_s20, [#allocation4]  }
  0x24   :  { %s446_s12 = scalar_lea.hbm %s622_s3, 2048 }
  0x25   :  { %p447_p2 = scmp.ne.s32.totalorder %s622_s3, %s446_s12  ;;  %p450_p3 = scmp.lt.u32.totalorder %s446_s12, %s622_s3 }
  0x27   :  { %p452_p4 = pnand %p450_p3, %p447_p2 }
  0x29   :  { %455 = shalt.err (!%p452_p4)
}
  0x2a   :  { %s456_s19 = scalar_lea.vmem %s48_s22, 2048  ;;  %p461_p6 = scmp.lt.s32.totalorder %s48_s22, %s48_s22 }
  0x2b   :  { %p457_p5 = scmp.ne.s32.totalorder %s48_s22, %s456_s19  ;;  %p462_p7 = scmp.lt.s32.totalorder %s456_s19, %s456_s19 }
  0x2d   :  { %p463_p8 = por %p462_p7, %p461_p6 }
  0x2f   :  { %p464_p9 = pnand %p463_p8, %p457_p5 }
  0x31   :  { %467 = shalt.err (!%p464_p9)
}
  0x32   :  { %53 = dma.hbm_to_vmem [thread:$0]  %s622_s3, 2048, %s48_s22, [#allocation7], %s497_s15, %s497_s15, %s498_s16  }
  0x33   :  { %490 = dma.done.wait [#allocation4], 128  }
  0x34   :  { %491 = vsyncadd [#allocation4], 4294967168 }
  0x35   :  { %492 = dma.done.wait [#allocation7], 2560  }
  0x36   :  { %493 = vsyncadd [#allocation7], 4294964736  ;;  %v501_v0 = vmov 0.0|0.0   ;;  %vm502_vm0 = vmmov 0   ;;  %v503_v1 = vmov 0.0   ;;  %v70_v2 = vld [vmem:[#allocation6] sm:$0xff] }
  0x37   :  { %359 = vmatprep.subr.bf16.mxu0 %v501_v0  ;;  %321 = vmatprep.mubr.msk.f32.mxu0 %vm502_vm0, %v503_v1  ;;  %v71_v3 = vld [vmem:[#allocation6 + $0x8] sm:$0xff]  ;;  %v72_v4 = vld [vmem:[#allocation6 + $0x10] sm:$0xff]  ;;  %v73_v6 = vld [vmem:[#allocation6 + $0x18] sm:$0xff]  ;;  %vm81_vm1 = vcmask 261120   ;;  %vm250_vm2 = vcmask 523264  }
  0x38   :  { %365 = vmatprep.subr.bf16.mxu1 %v501_v0  ;;  %356 = vmatprep.mubr.msk.f32.mxu1 %vm502_vm0, %v503_v1  ;;  %v360_v5 = vpack.c.bf16 %v71_v3, %v70_v2  ;;  %v156_v7 = vld [vmem:[#allocation8] sm:$0xff]  ;;  %v157_v8 = vld [vmem:[#allocation8 + $0x8] sm:$0xff]  ;;  %v158_v9 = vld [vmem:[#allocation8 + $0x10] sm:$0xff]  ;;  %v363_v11 = vpack.c.bf16 %v73_v6, %v72_v4 }
  0x39   :  { %v159_v10 = vld [vmem:[#allocation8 + $0x18] sm:$0xff]  ;;  %v366_v12 = vpack.c.bf16 %v157_v8, %v156_v7  ;;  %v160_v14 = vld [vmem:[#allocation8 + $0x20] sm:$0xff]  ;;  %v161_v15 = vld [vmem:[#allocation8 + $0x28] sm:$0xff] }
  0x3a   :  { %361 = vmatpush3.bf16.msra.mxu0 %v360_v5  ;;  %v369_v13 = vpack.c.bf16 %v159_v10, %v158_v9  ;;  %v69_v16 = vld [vmem:[#allocation3] sm:$0xff]  ;;  %v372_v17 = vpack.c.bf16 %v161_v15, %v160_v14  ;;  %v162_v18 = vld [vmem:[#allocation8 + $0x30] sm:$0xff]  ;;  %v164_v21 = vld [vmem:[#allocation8 + $0x40] sm:$0xff] }
  0x3b   :  { %362 = vmatprep.subr.bf16.mxu0 %v501_v0  ;;  %367 = vmatpush3.bf16.msra.mxu1 %v366_v12  ;;  %v163_v19 = vld [vmem:[#allocation8 + $0x38] sm:$0xff]  ;;  %v165_v22 = vld [vmem:[#allocation8 + $0x48] sm:$0xff]  ;;  %v166_v24 = vld [vmem:[#allocation8 + $0x50] sm:$0xff] }
  0x3c   :  { %368 = vmatprep.subr.bf16.mxu1 %v501_v0  ;;  %v375_v20 = vpack.c.bf16 %v163_v19, %v162_v18  ;;  %v378_v23 = vpack.c.bf16 %v165_v22, %v164_v21  ;;  %v167_v25 = vld [vmem:[#allocation8 + $0x58] sm:$0xff]  ;;  %v168_v27 = vld [vmem:[#allocation8 + $0x60] sm:$0xff]  ;;  %v169_v28 = vld [vmem:[#allocation8 + $0x68] sm:$0xff] }
  0x3d   :  { %v381_v26 = vpack.c.bf16 %v167_v25, %v166_v24  ;;  %v384_v29 = vpack.c.bf16 %v169_v28, %v168_v27  ;;  %v170_v30 = vld [vmem:[#allocation8 + $0x70] sm:$0xff]  ;;  %v171_v31 = vld [vmem:[#allocation8 + $0x78] sm:$0xff] }
  0x3e   :  { %364 = vmatpush3.bf16.msra.mxu0 %v363_v11  ;;  %v387_v32 = vpack.c.bf16 %v171_v31, %v170_v30  ;;  %v287_v33 = vld [vmem:[%s621_s2] ss:$0 sm:$0xff]  ;;  %s504_s2 = smov [#allocation9]  }
  0x3f   :  { %370 = vmatpush3.bf16.msra.mxu1 %v369_v13  ;;  %v289_v38 = vld [vmem:[%s623_s4] ss:$0 sm:$0xff]  ;;  %s273_s24 = sshll.u32 %s504_s2, 4  ;;  %s274_s24 = int_to_ptr.vmem [resolvable:$true] %s273_s24 }
  0x40   :  { %371 = vmatprep.subr.bf16.mxu1 %v501_v0  ;;  %v290_v42 = vld [vmem:[%s624_s5] ss:$0 sm:$0xff]  ;;  %s468_s25 = scalar_lea.vmem %s274_s24, 128  ;;  %p473_p11 = scmp.lt.s32.totalorder %s274_s24, %s274_s24 }
  0x41   :  { %322 = vmatmul.mubr.msk.f32.vlgmr.msra.gmra.mrb[0].mxu0 %vm81_vm1, %v69_v16  ;;  %p469_p10 = scmp.ne.s32.totalorder %s274_s24, %s468_s25  ;;  %p474_p12 = scmp.lt.s32.totalorder %s468_s25, %s468_s25 }
  0x43   :  { %373 = vmatpush3.bf16.msra.mxu1 %v372_v17  ;;  %p475_p13 = por %p474_p12, %p473_p11 }
  0x44   :  { %374 = vmatprep.subr.bf16.mxu1 %v501_v0 }
  0x45   :  { %p476_p0 = pnand %p475_p13, %p469_p10 }
  0x47   :  { %376 = vmatpush3.bf16.msra.mxu1 %v375_v20 }
  0x48   :  { %377 = vmatprep.subr.bf16.mxu1 %v501_v0 }
  0x4b   :  { %379 = vmatpush3.bf16.msra.mxu1 %v378_v23 }
  0x4c   :  { %380 = vmatprep.subr.bf16.mxu1 %v501_v0 }
  0x4f   :  { %382 = vmatpush3.bf16.msra.mxu1 %v381_v26 }
  0x50   :  { %383 = vmatprep.subr.bf16.mxu1 %v501_v0 }
  0x53   :  { %385 = vmatpush3.bf16.msra.mxu1 %v384_v29 }
  0x54   :  { %386 = vmatprep.subr.bf16.mxu1 %v501_v0 }
  0x57   :  { %388 = vmatpush3.bf16.msra.mxu1 %v387_v32 }
 0x114   :  { %v151_v34 = vpop.f32.mrb[0].mxu0 }
 0x115   :  { %v152_v35 = vadd.f32 %v287_v33, %v151_v34  ;;  %v323_v36 = vpop.f32.mrb[1].mxu0 }
 0x117   :  { %398 = vtanh.f32 %v152_v35 }
 0x121   :  { %v399_v37 = vpop.eup %398 }
 0x122   :  { %357 = vmatmul.mubr.f32.vlgmr.msra.gmra.mrb[0].mxu1 %v399_v37 }
 0x1f5   :  { %v245_v39 = vpop.f32.mrb[0].mxu1 }
 0x1f6   :  { %v246_v40 = vadd.f32 %v289_v38, %v245_v39  ;;  %v358_v41 = vpop.f32.mrb[1].mxu1 }
 0x1f8   :  { %400 = vtanh.f32 %v246_v40 }
 0x202   :  { %v401_v43 = vpop.eup %400 }
 0x203   :  { %v259_v44 = vmul.f32 %v401_v43, %v290_v42  ;;  %251 = vst.msk [vmem:[#allocation9] sm:$0xff] %vm250_vm2, %v401_v43 }
 0x205   :  { %260 = vadd.xlane.f32.xlu0 %v259_v44 }
 0x206   :  { %479 = shalt.err (!%p476_p0)
}
 0x207   :  { %s480_s27 = scalar_lea.hbm %s626_s7, 128 }
 0x208   :  { %p481_p1 = scmp.ne.s32.totalorder %s626_s7, %s480_s27  ;;  %p484_p2 = scmp.lt.u32.totalorder %s480_s27, %s626_s7 }
 0x20a   :  { %p486_p3 = pnand %p484_p2, %p481_p1 }
 0x20c   :  { %489 = shalt.err (!%p486_p3)
}
 0x20d   :  { %276 = dma.vmem_to_hbm [thread:$0]  %s274_s24, 128, %s626_s7, [#allocation5]   ;;  %v263_v45 = vstv %s625_s6  ;;  %vm265_vm3 = vcmask 7168  }
 0x292   :  { %v261_v46 = vpop.xlane.xlu0 %260 }
 0x293   :  { %v264_v47 = vadd.f32 %v263_v45, %v261_v46 }
 0x295   :  { %266 = vst.msk [vmem:[%s627_s8] sm:$0xff] %vm265_vm3, %v264_v47 }
 0x296   :  { %494 = dma.done.wait [#allocation5], 128  }
 0x297   :  { %495 = vsyncadd [#allocation5], 4294967168 }
 0x298   :  { %284 = vsyncpa [#allocation4], 1 }
 0x299   :  { %285 = vsyncpa [#allocation7], 1 }
 0x29a   :  { %286 = vsyncpa [#allocation5], 1 }

</bundles_post_ra>
